<compile_context>
chip_gen: v7x
topology: tpu7x:2x2x1
jax: 0.10.0
libtpu: 0.0.40
codegen_flags: <defaults>
</compile_context>

<pallas_src>
import functools

import jax
import jax.numpy as jnp
from jax.experimental import pallas as pl
from jax.experimental.pallas import tpu as pltpu


# ---------------------------------------------------------------------------
# VMEM sizing helpers (generation-aware)
# ---------------------------------------------------------------------------
def _vmem_capacity_bytes():
    try:
        info = pltpu.get_tpu_info()
        cap = getattr(info, "vmem_capacity_bytes", None)
        if cap:
            return int(cap)
    except Exception:
        pass
    return 64 * 1024 * 1024  # conservative fallback (v7x per-TC VMEM)


def _step_vmem_bytes(th, W, C, O, itemsize):
    """Everything resident for one grid step (inputs/outputs double-buffered,
    plus in-kernel temporaries)."""
    S = th * W
    x_blk = C * S * itemsize
    halo_blk = C * 2 * W * itemsize
    out_blk = O * S * 4
    wb_blk = O * 9 * C * itemsize + O * 4
    xfp_tmp = C * ((th + 2) * W + 2) * itemsize      # halo-extended flat image
    patch_tmp = 2 * 9 * C * S * itemsize             # taps + concatenated patch
    acc_tmp = O * S * 4                              # f32 accumulator
    return 2 * (x_blk + halo_blk + out_blk + wb_blk) + xfp_tmp + patch_tmp + acc_tmp


def _pick_row_tile(N, H, W, C, O, itemsize, budget_bytes):
    """Largest row tile th dividing H s.t. the step fits the budget, with
    constraints for unmasked stores: th % 8 == 0 and (th*W) % 128 == 0 (or
    th == H, i.e. full-extent block).  Prefers keeping >= 2 grid steps so
    both v7x TensorCores (and the pipeline) have work."""
    cands = [th for th in range(H, 0, -1)
             if H % th == 0 and (th == H or (th % 8 == 0 and (th * W) % 128 == 0))]
    fitting = [th for th in cands
               if _step_vmem_bytes(th, W, C, O, itemsize) <= budget_bytes]
    pool = fitting if fitting else [cands[-1]]
    multi = [th for th in pool if N * (H // th) >= 2]
    return (multi or pool)[0]


# ---------------------------------------------------------------------------
# Kernel
# ---------------------------------------------------------------------------
def _conv3x3_elu_kernel(x_ref, halo_ref, w_ref, b_ref, o_ref, *, TH, W, C):
    """One (batch, row-tile) grid step.

    x_ref   : (C, TH*W)   flat th-row band of the raw NCHW input
    halo_ref: (C, 2*W)    [reflected row above | reflected row below] the band
    w_ref   : (O, 9*C)    packed conv weights (tap-major, channel-minor cols)
    b_ref   : (O, 1)      conv bias (broadcast over lanes)
    o_ref   : (O, TH*W)   lane-dense output slab (spatial on lanes)
    """
    S = TH * W
    x = x_ref[...]
    halo = halo_ref[...]

    # Halo-extended flat image with one dummy lane on each side so every tap
    # below is an in-bounds static lane slice (the dummy lanes only land in
    # positions that the column-reflection fix-ups overwrite).
    xfp = jnp.concatenate(
        [halo[:, :1], halo[:, :W], x, halo[:, W:], halo[:, W - 1:W]], axis=1
    )  # (C, (TH+2)*W + 2)

    # Column index within each image row (for the reflection fix-ups).
    col = jax.lax.broadcasted_iota(jnp.int32, (1, S), 1) % W
    first_col = col == 0
    last_col = col == (W - 1)

    # im2col: for each row offset dh, three lane-shifted views give columns
    # w-1 / w / w+1 of row h+dh; column reflection (w==0 -> col 1,
    # w==W-1 -> col W-2) is a masked select.  Spatial stays on lanes.
    taps = []
    for dh in range(3):
        base = dh * W + 1  # +1 for the front dummy lane
        vm1 = xfp[:, base - 1: base - 1 + S]   # column w-1 of row h+dh
        v00 = xfp[:, base:     base + S]       # column w   of row h+dh
        vp1 = xfp[:, base + 1: base + 1 + S]   # column w+1 of row h+dh
        taps.append(jnp.where(first_col, vp1, vm1))   # dw = 0
        taps.append(v00)                               # dw = 1
        taps.append(jnp.where(last_col, vm1, vp1))     # dw = 2
    patch = jnp.concatenate(taps, axis=0)              # (9*C, TH*W)

    # Single fused MXU contraction (K = 9*C), f32 accumulation.
    acc = jnp.dot(w_ref[...], patch, preferred_element_type=jnp.float32)
    acc = acc + b_ref[...]                             # (O, 1) broadcast

    # ELU (alpha = 1): x if x > 0 else exp(x) - 1 (clamped exp on the
    # discarded branch; matches the f32 reference).
    neg = jnp.exp(jnp.minimum(acc, 0.0)) - 1.0
    o_ref[...] = jnp.where(acc > 0, acc, neg).astype(o_ref.dtype)


# ---------------------------------------------------------------------------
# Wrapper
# ---------------------------------------------------------------------------
def conv_block(x_nchw, weight_ochw, bias_o, *, row_tile=None, compute_dtype=None):
    """ConvBlock forward. x_nchw: (N, C, H, W). Returns (N, O, H, W).

    compute_dtype=jnp.bfloat16 casts activations/weights (f32 accumulation
    stays) to halve HBM read traffic; default keeps f32 for 1e-5 accuracy.
    """
    N, C, H, W = x_nchw.shape
    O = weight_ochw.shape[0]
    assert weight_ochw.shape == (O, C, 3, 3)
    assert H >= 2 and W >= 2, "ReflectionPad2d(1) requires H, W >= 2"

    out_dtype = x_nchw.dtype
    if compute_dtype is not None:
        x_nchw = x_nchw.astype(compute_dtype)
        weight_ochw = weight_ochw.astype(compute_dtype)
    itemsize = jnp.dtype(x_nchw.dtype).itemsize

    # Generation-aware VMEM limit + row-tile budget (v7x: 48/24 MiB,
    # v5e/v6e: 96/48 MiB).
    vmem_limit = min(_vmem_capacity_bytes() * 3 // 4, 96 * 1024 * 1024)
    budget = vmem_limit // 2

    if row_tile is not None:
        if H % row_tile or (row_tile != H and (row_tile % 8 or (row_tile * W) % 128)):
            raise ValueError(f"invalid row_tile={row_tile} for H={H}, W={W}")
        th = row_tile
    else:
        th = _pick_row_tile(N, H, W, C, O, itemsize, budget)
    num_tiles = H // th
    S = th * W

    # ---- glue (cheap / metadata-only) ------------------------------------
    # Activations stay NCHW; flattening (H, W) -> H*W is a free reshape.
    x_flat = x_nchw.reshape(N, C, H * W)

    # Per-tile halo rows: the (reflected) row above / below each th-row band.
    r = jnp.arange(num_tiles)
    top_idx = jnp.where(r == 0, 1, r * th - 1)
    bot_idx = jnp.where(r == num_tiles - 1, H - 2, r * th + th)
    top = jnp.take(x_nchw, top_idx, axis=2)            # (N, C, T, W)
    bot = jnp.take(x_nchw, bot_idx, axis=2)            # (N, C, T, W)
    halos = jnp.transpose(jnp.concatenate([top, bot], axis=-1),
                          (0, 2, 1, 3))                # (N, T, C, 2W)

    # Weights: OIHW -> (O, kh, kw, C) -> (O, 9C) (tap-major, channel-minor,
    # matching the kernel's patch row order).  Bias -> (O, 1).
    wmat = jnp.transpose(weight_ochw, (0, 2, 3, 1)).reshape(O, 9 * C)
    bvec = bias_o.astype(jnp.float32).reshape(O, 1)

    kernel = functools.partial(_conv3x3_elu_kernel, TH=th, W=W, C=C)

    out = pl.pallas_call(
        kernel,
        out_shape=jax.ShapeDtypeStruct((N, O, H * W), out_dtype),
        grid_spec=pltpu.PrefetchScalarGridSpec(
            num_scalar_prefetch=0,
            grid=(N, num_tiles),
            in_specs=[
                pl.BlockSpec((None, C, S), lambda n, t: (n, 0, t)),
                pl.BlockSpec((None, None, C, 2 * W), lambda n, t: (n, t, 0, 0)),
                # Constant-index weight/bias blocks (pipeline re-uses the same
                # tile every step).  pipeline_mode=pl.Buffered(1) would
                # single-buffer them; at these sizes the saving is negligible.
                pl.BlockSpec((O, 9 * C), lambda n, t: (0, 0)),
                pl.BlockSpec((O, 1), lambda n, t: (0, 0)),
            ],
            out_specs=pl.BlockSpec((None, O, S), lambda n, t: (n, 0, t)),
        ),
        compiler_params=pltpu.CompilerParams(
            dimension_semantics=("parallel", "parallel"),
            vmem_limit_bytes=vmem_limit,
        ),
    )(x_flat, halos, wmat, bvec)

    return out.reshape(N, O, H, W)  # free contiguous reshape, already NCHW


# ---------------------------------------------------------------------------
# Pure-JAX reference + self-test
# ---------------------------------------------------------------------------
def _reference(x_nchw, weight_ochw, bias_o):
    xp = jnp.pad(x_nchw, ((0, 0), (0, 0), (1, 1), (1, 1)), mode="reflect")
    y = jax.lax.conv_general_dilated(
        xp, weight_ochw, window_strides=(1, 1), padding="VALID",
        dimension_numbers=("NCHW", "OIHW", "NCHW"),
    ) + bias_o.reshape(1, -1, 1, 1)
    return jnp.where(y > 0, y, jnp.exp(y) - 1.0)


if __name__ == "__main__":
    # Small shapes: batch=2, in_channels=4, out_channels=8, spatial=16x16
    N, C, O, H, W = 2, 4, 8, 16, 16

    key = jax.random.PRNGKey(0)
    kx, kw, kb = jax.random.split(key, 3)

    x = jax.random.normal(kx, (N, C, H, W), dtype=jnp.float32)
    fan_in = C * 3 * 3
    bound = 1.0 / (fan_in ** 0.5)
    weight = jax.random.uniform(kw, (O, C, 3, 3), jnp.float32, -bound, bound)
    bias = jax.random.uniform(kb, (O,), jnp.float32, -bound, bound)

    ref = jax.block_until_ready(_reference(x, weight, bias))

    # f32, auto row tile (here th == H -> grid (2, 1)).
    out = jax.block_until_ready(jax.jit(conv_block)(x, weight, bias))
    assert out.shape == (N, O, H, W), out.shape
    assert jnp.allclose(out, ref, atol=1e-5, rtol=1e-5), "f32 (auto tile) mismatch"

    # f32, forced row tiling (th=8 -> grid (2, 2)): exercises the halo path.
    out_t = jax.block_until_ready(
        jax.jit(functools.partial(conv_block, row_tile=8))(x, weight, bias))
    assert jnp.allclose(out_t, ref, atol=1e-5, rtol=1e-5), "f32 (row_tile=8) mismatch"

    # bf16 activations/weights with f32 accumulation (halved HBM read traffic).
    out_bf = jax.block_until_ready(
        jax.jit(functools.partial(conv_block, compute_dtype=jnp.bfloat16))(
            x, weight, bias))
    assert jnp.allclose(out_bf, ref, atol=5e-2, rtol=5e-2), "bf16 mismatch"

    print("KERNEL_OK")
</pallas_src>

<mosaic_0001>
module attributes {stable_mosaic.version = 11 : i64} {
  func.func @_conv3x3_elu_kernel(%arg0: i32, %arg1: i32, %arg2: memref<1x4x256xf32, #tpu.memory_space<vmem>>, %arg3: memref<1x1x4x32xf32, #tpu.memory_space<vmem>>, %arg4: memref<8x36xf32, #tpu.memory_space<vmem>>, %arg5: memref<8x1xf32, #tpu.memory_space<vmem>>, %arg6: memref<1x8x256xf32, #tpu.memory_space<vmem>>) attributes {dimension_semantics = [#tpu.dimension_semantics<parallel>, #tpu.dimension_semantics<parallel>], iteration_bounds = array<i64: 2, 1>, scalar_prefetch = 0 : i64, scratch_operands = 0 : i64, tpu.core_type = #tpu.core_type<tc>, window_params = [{transform_indices = @transform_0, window_bounds = array<i64: 1, 4, 256>}, {transform_indices = @transform_1, window_bounds = array<i64: 1, 1, 4, 32>}, {pipeline_mode = #tpu.pipeline_mode<synchronous>, transform_indices = @transform_2, window_bounds = array<i64: 8, 36>}, {pipeline_mode = #tpu.pipeline_mode<synchronous>, transform_indices = @transform_3, window_bounds = array<i64: 8, 1>}, {transform_indices = @transform_4, window_bounds = array<i64: 1, 8, 256>}]} {
    %c0 = arith.constant 0 : index
    %c0_0 = arith.constant 0 : index
    %c0_1 = arith.constant 0 : index
    %0 = vector.load %arg2[%c0, %c0_0, %c0_1] : memref<1x4x256xf32, #tpu.memory_space<vmem>>, vector<1x4x256xf32>
    %1 = vector.shape_cast %0 : vector<1x4x256xf32> to vector<4x256xf32>
    %c0_2 = arith.constant 0 : index
    %c0_3 = arith.constant 0 : index
    %c0_4 = arith.constant 0 : index
    %c0_5 = arith.constant 0 : index
    %2 = vector.load %arg3[%c0_2, %c0_3, %c0_4, %c0_5] : memref<1x1x4x32xf32, #tpu.memory_space<vmem>>, vector<1x1x4x32xf32>
    %3 = vector.shape_cast %2 : vector<1x1x4x32xf32> to vector<4x32xf32>
    %4 = vector.extract_strided_slice %3 {offsets = [0, 0], sizes = [4, 1], strides = [1, 1]} : vector<4x32xf32> to vector<4x1xf32>
    %5 = vector.extract_strided_slice %3 {offsets = [0, 0], sizes = [4, 16], strides = [1, 1]} : vector<4x32xf32> to vector<4x16xf32>
    %6 = vector.extract_strided_slice %3 {offsets = [0, 16], sizes = [4, 16], strides = [1, 1]} : vector<4x32xf32> to vector<4x16xf32>
    %7 = vector.extract_strided_slice %3 {offsets = [0, 15], sizes = [4, 1], strides = [1, 1]} : vector<4x32xf32> to vector<4x1xf32>
    %8 = tpu.concatenate %4, %5, %1, %6, %7 in 1 : vector<4x1xf32>, vector<4x16xf32>, vector<4x256xf32>, vector<4x16xf32>, vector<4x1xf32> -> vector<4x290xf32>
    %9 = tpu.iota {dimensions = array<i32: 1>} : vector<1x256xi32>
    %c16_i32 = arith.constant 16 : i32
    %c0_i32 = arith.constant 0 : i32
    %10 = arith.cmpi eq, %c16_i32, %c0_i32 : i32
    %c1_i32 = arith.constant 1 : i32
    %11 = arith.select %10, %c1_i32, %c16_i32 : i32
    %12 = vector.broadcast %11 : i32 to vector<1x256xi32>
    %13 = arith.remsi %9, %12 : vector<1x256xi32>
    %c0_i32_6 = arith.constant 0 : i32
    %14 = vector.broadcast %c0_i32_6 : i32 to vector<1x256xi32>
    %15 = arith.cmpi ne, %13, %14 : vector<1x256xi32>
    %c0_i32_7 = arith.constant 0 : i32
    %16 = vector.broadcast %c0_i32_7 : i32 to vector<1x256xi32>
    %17 = arith.cmpi slt, %13, %16 : vector<1x256xi32>
    %c0_i32_8 = arith.constant 0 : i32
    %18 = arith.cmpi slt, %11, %c0_i32_8 : i32
    %19 = vector.broadcast %18 : i1 to vector<1x256xi1>
    %20 = vector.broadcast %19 : vector<1x256xi1> to vector<1x256xi1>
    %21 = arith.xori %17, %20 : vector<1x256xi1>
    %22 = arith.andi %21, %15 : vector<1x256xi1>
    %23 = vector.broadcast %11 : i32 to vector<1x256xi32>
    %24 = arith.addi %13, %23 : vector<1x256xi32>
    %25 = arith.select %22, %24, %13 : vector<1x256xi1>, vector<1x256xi32>
    %c0_i32_9 = arith.constant 0 : i32
    %26 = vector.broadcast %c0_i32_9 : i32 to vector<1x256xi32>
    %27 = arith.cmpi eq, %25, %26 : vector<1x256xi32>
    %c15_i32 = arith.constant 15 : i32
    %28 = vector.broadcast %c15_i32 : i32 to vector<1x256xi32>
    %29 = arith.cmpi eq, %25, %28 : vector<1x256xi32>
    %30 = vector.extract_strided_slice %8 {offsets = [0, 0], sizes = [4, 256], strides = [1, 1]} : vector<4x290xf32> to vector<4x256xf32>
    %31 = vector.extract_strided_slice %8 {offsets = [0, 1], sizes = [4, 256], strides = [1, 1]} : vector<4x290xf32> to vector<4x256xf32>
    %32 = vector.extract_strided_slice %8 {offsets = [0, 2], sizes = [4, 256], strides = [1, 1]} : vector<4x290xf32> to vector<4x256xf32>
    %33 = vector.shape_cast %27 : vector<1x256xi1> to vector<1x256xi1>
    %34 = vector.broadcast %33 : vector<1x256xi1> to vector<4x256xi1>
    %35 = arith.select %34, %32, %30 : vector<4x256xi1>, vector<4x256xf32>
    %36 = vector.shape_cast %29 : vector<1x256xi1> to vector<1x256xi1>
    %37 = vector.broadcast %36 : vector<1x256xi1> to vector<4x256xi1>
    %38 = arith.select %37, %30, %32 : vector<4x256xi1>, vector<4x256xf32>
    %39 = vector.extract_strided_slice %8 {offsets = [0, 16], sizes = [4, 256], strides = [1, 1]} : vector<4x290xf32> to vector<4x256xf32>
    %40 = vector.extract_strided_slice %8 {offsets = [0, 17], sizes = [4, 256], strides = [1, 1]} : vector<4x290xf32> to vector<4x256xf32>
    %41 = vector.extract_strided_slice %8 {offsets = [0, 18], sizes = [4, 256], strides = [1, 1]} : vector<4x290xf32> to vector<4x256xf32>
    %42 = vector.shape_cast %27 : vector<1x256xi1> to vector<1x256xi1>
    %43 = vector.broadcast %42 : vector<1x256xi1> to vector<4x256xi1>
    %44 = arith.select %43, %41, %39 : vector<4x256xi1>, vector<4x256xf32>
    %45 = vector.shape_cast %29 : vector<1x256xi1> to vector<1x256xi1>
    %46 = vector.broadcast %45 : vector<1x256xi1> to vector<4x256xi1>
    %47 = arith.select %46, %39, %41 : vector<4x256xi1>, vector<4x256xf32>
    %48 = vector.extract_strided_slice %8 {offsets = [0, 32], sizes = [4, 256], strides = [1, 1]} : vector<4x290xf32> to vector<4x256xf32>
    %49 = vector.extract_strided_slice %8 {offsets = [0, 33], sizes = [4, 256], strides = [1, 1]} : vector<4x290xf32> to vector<4x256xf32>
    %50 = vector.extract_strided_slice %8 {offsets = [0, 34], sizes = [4, 256], strides = [1, 1]} : vector<4x290xf32> to vector<4x256xf32>
    %51 = vector.shape_cast %27 : vector<1x256xi1> to vector<1x256xi1>
    %52 = vector.broadcast %51 : vector<1x256xi1> to vector<4x256xi1>
    %53 = arith.select %52, %50, %48 : vector<4x256xi1>, vector<4x256xf32>
    %54 = vector.shape_cast %29 : vector<1x256xi1> to vector<1x256xi1>
    %55 = vector.broadcast %54 : vector<1x256xi1> to vector<4x256xi1>
    %56 = arith.select %55, %48, %50 : vector<4x256xi1>, vector<4x256xf32>
    %57 = tpu.concatenate %35, %31, %38, %44, %40, %47, %53, %49, %56 in 0 : vector<4x256xf32>, vector<4x256xf32>, vector<4x256xf32>, vector<4x256xf32>, vector<4x256xf32>, vector<4x256xf32>, vector<4x256xf32>, vector<4x256xf32>, vector<4x256xf32> -> vector<36x256xf32>
    %c0_10 = arith.constant 0 : index
    %c0_11 = arith.constant 0 : index
    %58 = vector.load %arg4[%c0_10, %c0_11] : memref<8x36xf32, #tpu.memory_space<vmem>>, vector<8x36xf32>
    %cst = arith.constant dense<0.000000e+00> : vector<8x256xf32>
    %59 = tpu.matmul %58, %57, %cst {dimension_numbers = #tpu.dot_dimension_numbers<[1], [0], [0], [1], [0, 0, 1, 1], [], []>} : vector<8x36xf32>, vector<36x256xf32>, vector<8x256xf32> -> vector<8x256xf32>
    %c0_12 = arith.constant 0 : index
    %c0_13 = arith.constant 0 : index
    %60 = vector.load %arg5[%c0_12, %c0_13] : memref<8x1xf32, #tpu.memory_space<vmem>>, vector<8x1xf32>
    %61 = vector.broadcast %60 : vector<8x1xf32> to vector<8x256xf32>
    %62 = arith.addf %59, %61 : vector<8x256xf32>
    %cst_14 = arith.constant 0.000000e+00 : f32
    %63 = vector.broadcast %cst_14 : f32 to vector<8x256xf32>
    %64 = arith.minimumf %62, %63 : vector<8x256xf32>
    %65 = math.exp %64 : vector<8x256xf32>
    %cst_15 = arith.constant 1.000000e+00 : f32
    %66 = vector.broadcast %cst_15 : f32 to vector<8x256xf32>
    %67 = arith.subf %65, %66 : vector<8x256xf32>
    %cst_16 = arith.constant 0.000000e+00 : f32
    %68 = vector.broadcast %cst_16 : f32 to vector<8x256xf32>
    %69 = arith.cmpf ogt, %62, %68 : vector<8x256xf32>
    %70 = arith.select %69, %62, %67 : vector<8x256xi1>, vector<8x256xf32>
    %c0_17 = arith.constant 0 : index
    %c0_18 = arith.constant 0 : index
    %c0_19 = arith.constant 0 : index
    %71 = vector.load %arg6[%c0_17, %c0_18, %c0_19] : memref<1x8x256xf32, #tpu.memory_space<vmem>>, vector<1x8x256xf32>
    %72 = vector.shape_cast %71 : vector<1x8x256xf32> to vector<8x256xf32>
    %73 = vector.shape_cast %70 : vector<8x256xf32> to vector<1x8x256xf32>
    tpu.vector_store %arg6[%c0_17, %c0_18, %c0_19], %73 {strides = array<i32>} : memref<1x8x256xf32, #tpu.memory_space<vmem>>, vector<1x8x256xf32>,
    return
  }
  func.func @transform_0(%arg0: i32, %arg1: i32) -> (i32, i32, i32) {
    %c0_i32 = arith.constant 0 : i32
    %c0_i32_0 = arith.constant 0 : i32
    return %arg0, %c0_i32, %arg1 : i32, i32, i32
  }
  func.func @transform_1(%arg0: i32, %arg1: i32) -> (i32, i32, i32, i32) {
    %c0_i32 = arith.constant 0 : i32
    %c0_i32_0 = arith.constant 0 : i32
    %c0_i32_1 = arith.constant 0 : i32
    return %arg0, %arg1, %c0_i32, %c0_i32_0 : i32, i32, i32, i32
  }
  func.func @transform_2(%arg0: i32, %arg1: i32) -> (i32, i32) {
    %c0_i32 = arith.constant 0 : i32
    %c0_i32_0 = arith.constant 0 : i32
    %c0_i32_1 = arith.constant 0 : i32
    return %c0_i32, %c0_i32_0 : i32, i32
  }
  func.func @transform_3(%arg0: i32, %arg1: i32) -> (i32, i32) {
    %c0_i32 = arith.constant 0 : i32
    %c0_i32_0 = arith.constant 0 : i32
    %c0_i32_1 = arith.constant 0 : i32
    return %c0_i32, %c0_i32_0 : i32, i32
  }
  func.func @transform_4(%arg0: i32, %arg1: i32) -> (i32, i32, i32) {
    %c0_i32 = arith.constant 0 : i32
    %c0_i32_0 = arith.constant 0 : i32
    return %arg0, %c0_i32, %arg1 : i32, i32, i32
  }
}

</mosaic_0001>

<bundles_post_ra>
// kernel: conv_block.1
= control target key start
LH: loop header
LB: loop body
LE: loop exit
PB: predicated region body
PF: predicated region fallthrough
CT: control target
= control target key end

     0   :  { %s822_s15 = smov 0   ;;  %s824_s16 = smov 0   ;;  %s958_s0 = inlined_call_operand.vmem [shape: f32[2,4,256], index: 0, kind: input, shape index: {}]   ;;  %s959_s1 = inlined_call_operand.vmem [shape: f32[2,1,4,32], index: 1, kind: input, shape index: {}]   ;;  %s960_s2 = inlined_call_operand.vmem [shape: f32[8,36], index: 2, kind: input, shape index: {}]   ;;  %s961_s3 = inlined_call_operand.vmem [shape: f32[8,1], index: 3, kind: input, shape index: {}]   ;;  %s962_s4 = inlined_call_operand.vmem [shape: f32[2,8,256], index: 4, kind: output, shape index: {}]  }
   0x1   :  { %s826_s17 = smov 0  }
   0x2 LB: > { %s26_s18 = sadd.s32 1, %s778_s16  ;;  %p664_p0 = scmp.ge.s32.totalorder %s782_s17, 1  ;;  %s782_s17 = sphi %s826_s17, %s14_s17   ;;  %s778_s16 = sphi %s824_s16, %s972_s16   ;;  %s774_s15 = sphi %s822_s15, %s971_s15  }
   0x3   : > { %p28_p1 = scmp.ge.s32.totalorder %s26_s18, 2  ;;  %p197_p2 = scmp.lt.s32.totalorder %s782_s17, 3 }
   0x5   : > { %s974_s18 = smov (%p28_p1, %s26_s18), 0  ;;  %p198_p3 = pnand %p664_p0, %p197_p2 }
   0x6   : > { %p239_p4 = scmp.lt.s32.totalorder (!%p198_p3), %s774_s15, 1  ;;  %s784_s27 = smov (!%p198_p3), 1   ;;  %vm285_vm0 = vcmask (!%p198_p3), 7168   ;;  %vm277_vm1 = vcmask (!%p198_p3), 138240   ;;  %vm289_vm2 = vcmask (!%p198_p3), 269312   ;;  %v795_v17 = vmov (!%p198_p3), 0.0  }
   0x7   : > { %201 = sbr.rel (%p198_p3) target bundleno = 525 (0x20d), region = 36  ;;  %s785_s28 = smov (!%p198_p3), 17   ;;  %537 = vmatprep.mubr.f32.mxu0 (!%p198_p3), %v795_v17  ;;  %v796_v18 = vmov (!%p198_p3), 0   ;;  %v457_v19 = vld [vmem:[%s961_s3] sm:$0xff] (!%p198_p3)  ;;  %v291_v24 = vlaneseq (!%p198_p3)  ;;  %vm353_vm3 = vcmask (!%p198_p3), 900096   ;;  %vm364_vm4 = vcmask (!%p198_p3), 916480  }
   0x8   : > { %s786_s29 = smov (!%p198_p3), 18   ;;  %s787_s30 = smov (!%p198_p3), 112   ;;  %754 = vset.pattern.permute.xlu0 (!%p198_p3), %v796_v18  ;;  %vm390_vm6 = vcmask (!%p198_p3), 785408   ;;  %vm334_vm7 = vcmask (!%p198_p3), 1031168   ;;  %vm379_vm9 = vcmask (!%p198_p3), 769024   ;;  %vm408_vm12 = vcmask (!%p198_p3), 1039360  }
   0x9   : > { %s788_s5 = smov (!%p198_p3), 110   ;;  %s789_s6 = smov (!%p198_p3), 126   ;;  %v292_v27 = vand.u32 (!%p198_p3), 127, %v291_v24  ;;  %vm447_vm13 = vcmask (!%p198_p3), 1043456   ;;  %vm442_vm14 = vcmask (!%p198_p3), 777216   ;;  %vm425_vm15 = vcmask (!%p198_p3), 908288  }
   0xa   : > { %s790_s7 = smov (!%p198_p3), 94   ;;  %s791_s8 = smov (!%p198_p3), 96  }
   0xb   : > { %s792_s9 = smov (!%p198_p3), 127   ;;  %s793_s10 = smov (!%p198_p3), 95   ;;  %v293_v30 = vadd.s32 (!%p198_p3), 128, %v292_v27  ;;  %v298_v31 = vand.u32 (!%p198_p3), 15, %v292_v27 }
   0xc   : > { %s794_s11 = smov (!%p198_p3), 111  }
   0xd   : > { %v305_v34 = vand.u32 (!%p198_p3), 15, %v293_v30  ;;  %vm875_vm5 = vcmp.eq.s32.totalorder (!%p198_p3), %v298_v31, 0  ;;  %vm887_vm11 = vcmp.eq.s32.totalorder (!%p198_p3), %v298_v31, 15 }
   0xe   : > { %s976_s15 = smov (!%p239_p4, %s774_s15), 1 }
   0xf   : > { %s667_s19 = sshll.u32 %s976_s15, 2  ;;  %s677_s20 = sshll.u32 %s976_s15, 3  ;;  %vm879_vm8 = vcmp.eq.s32.totalorder %v305_v34, 0  ;;  %vm883_vm10 = vcmp.eq.s32.totalorder %v305_v34, 15 }
  0x10   : > { %s254_s23 = scalar_lea.vmem %s959_s1, %s667_s19  ;;  %s246_s26 = scalar_lea.vmem %s958_s0, %s677_s20 }
  0x11   : > { %v266_v0 = vld [vmem:[%s254_s23] sm:$0xf]  ;;  %s678_s20 = sshll.u32 %s976_s15, 4 }
  0x12   : > { %v265_v1 = vld [vmem:[%s246_s26] sm:$0xff]  ;;  %268 = vrot.lane.b32.xlu0 %v266_v0, %s784_s27  ;;  %s263_s23 = scalar_lea.vmem %s962_s4, %s678_s20 }
  0x13   : > { %273 = vrot.lane.b32.xlu1 %v265_v1, %s785_s28  ;;  %v272_v2 = vcombine.high %v265_v1, %v265_v1 }
  0x16   : > { %275 = vrot.lane.b32.xlu0 %v272_v2, %s785_s28 }
  0x17   : > { %282 = vrot.lane.b32.xlu1 %v266_v0, %s786_s29 }
  0x84   : > { %v269_v3 = vpop.permute.xlu0 %268 }
  0x85   : > { %v274_v4 = vpop.permute.xlu1 %273  ;;  %v286_v5 = vsel %vm285_vm0, %v266_v0, %v269_v3  ;;  %vm463_vm0 = vcmask 293888  }
  0x86   : > { %v851_v6 = vsel %vm277_vm1, %v286_v5, %v274_v4 }
  0x87   : > { %358 = vrot.lane.b32.xlu1 %v851_v6, %s787_s30  ;;  %347 = vrot.lane.b32.xlu0 %v851_v6, %s788_s5  ;;  %v399_v13 = vrot.slane %v851_v6, 4 }
  0x88   : > { %v276_v7 = vpop.permute.xlu0 %275 }
  0x89   : > { %v288_v8 = vsel %vm277_vm1, %v276_v7, %v269_v3  ;;  %v283_v9 = vpop.permute.xlu1 %282  ;;  %v859_v10 = vsel %vm277_vm1, %v274_v4, %v276_v7 }
  0x8a   : > { %v290_v11 = vsel %vm289_vm2, %v288_v8, %v283_v9  ;;  %v400_v14 = vrot.slane %v859_v10, 4 }
  0x8b   : > { %328 = vrot.lane.b32.xlu1 %v851_v6, %s789_s6  ;;  %373 = vrot.lane.b32.xlu0 %v851_v6, %s790_s7  ;;  %v729_v12 = vpack.i.bf16 %v290_v11, %v859_v10  ;;  %v401_v15 = vrot.slane %v290_v11, 4 }
  0x8d   : > { %v739_v16 = vpack.i.bf16 %v401_v15, %v400_v14 }
  0x8f   : > { %384 = vrot.lane.b32.xlu1 %v851_v6, %s791_s8  ;;  %375 = vrot.lane.b32.xlu0 %v859_v10, %s790_s7 }
  0x93   : > { %730 = vrot.lane.b32.xlu1 %v729_v12, %s787_s30  ;;  %386 = vrot.lane.b32.xlu0 %v859_v10, %s791_s8 }
  0x97   : > { %402 = vrot.lane.b32.xlu1 %v399_v13, %s792_s9  ;;  %725 = vrot.lane.b32.xlu0 %v729_v12, %s788_s5 }
  0x9b   : > { %377 = vrot.lane.b32.xlu1 %v290_v11, %s790_s7  ;;  %735 = vrot.lane.b32.xlu0 %v729_v12, %s789_s6 }
  0x9f   : > { %388 = vrot.lane.b32.xlu1 %v290_v11, %s791_s8  ;;  %740 = vrot.lane.b32.xlu0 %v739_v16, %s792_s9 }
  0xa3   : > { %750 = vrot.lane.b32.xlu1 %v739_v16, %s793_s10  ;;  %745 = vrot.lane.b32.xlu0 %v729_v12, %s794_s11 }
  0xa7   : > { %436 = vrot.lane.b32.xlu1 %v399_v13, %s793_s10  ;;  %419 = vrot.lane.b32.xlu0 %v851_v6, %s794_s11 }
  0xab   : > { %460 = vperm.xlu0 %754, %v457_v19  }
  0xf9   : > { %v359_v20 = vpop.permute.xlu1 %358  ;;  %v348_v21 = vpop.permute.xlu0 %347 }
  0xfd   : > { %v329_v22 = vpop.permute.xlu1 %328  ;;  %v871_v23 = vpop.permute.xlu0 %373 }
 0x101   : > { %v385_v25 = vpop.permute.xlu1 %384  ;;  %v873_v26 = vpop.permute.xlu0 %375 }
 0x105   : > { %v731_v28 = vpop.permute.xlu1 %730  ;;  %v387_v29 = vpop.permute.xlu0 %386 }
 0x106   : > { %v733_v37 = vunpack.i.h.bf16 %v731_v28  ;;  %v732_v38 = vunpack.i.l.bf16 %v731_v28  ;;  %v391_v55 = vsel %vm390_vm6, %v385_v25, %v387_v29  ;;  %v380_v25 = vsel %vm379_vm9, %v871_v23, %v873_v26 }
 0x107   : > { %v397_v39 = vsel %vm887_vm11, %v391_v55, %v380_v25 }
 0x108   : > { %v365_v49 = vsel %vm364_vm4, %v359_v20, %v732_v38  ;;  %v366_v50 = vsel %vm364_vm4, %v732_v38, %v733_v37  ;;  %v456_v38 = vld [vmem:[%s960_s2] sm:$0xff] }
 0x109   : > { %v403_v32 = vpop.permute.xlu1 %402  ;;  %v726_v33 = vpop.permute.xlu0 %725 }
 0x10a   : > { %v728_v35 = vunpack.i.h.bf16 %v726_v33  ;;  %v727_v36 = vunpack.i.l.bf16 %v726_v33 }
 0x10c   : > { %v354_v40 = vsel %vm353_vm3, %v348_v21, %v727_v36  ;;  %v355_v41 = vsel %vm353_vm3, %v727_v36, %v728_v35 }
 0x10d   : > { %v378_v42 = vpop.permute.xlu1 %377  ;;  %v736_v43 = vpop.permute.xlu0 %735  ;;  %v370_v53 = vsel %vm879_vm8, %v355_v41, %v366_v50  ;;  %v369_v54 = vsel %vm875_vm5, %v354_v40, %v365_v49  ;;  %v372_v58 = vsel %vm883_vm10, %v366_v50, %v355_v41  ;;  %v371_v1 = vsel %vm887_vm11, %v365_v49, %v354_v40 }
 0x10e   : > { %v738_v45 = vunpack.i.h.bf16 %v736_v43  ;;  %v737_v46 = vunpack.i.l.bf16 %v736_v43  ;;  %v416_v0 = vrot.slane %v370_v53, 4  ;;  %v415_v2 = vrot.slane %v369_v54, 4 }
 0x10f   : > { %v381_v18 = vsel %vm379_vm9, %v873_v26, %v378_v42 }
 0x110   : > { %v335_v51 = vsel %vm334_vm7, %v329_v22, %v737_v46  ;;  %v336_v52 = vsel %vm334_vm7, %v737_v46, %v738_v45 }
 0x111   : > { %v389_v56 = vpop.permute.xlu1 %388  ;;  %v741_v57 = vpop.permute.xlu0 %740  ;;  %v346_v61 = vsel %vm883_vm10, %v859_v10, %v336_v52  ;;  %v345_v62 = vsel %vm887_vm11, %v851_v6, %v335_v51  ;;  %v340_v63 = vsel %vm879_vm8, %v336_v52, %v859_v10  ;;  %v339_v5 = vsel %vm875_vm5, %v335_v51, %v851_v6 }
 0x112   : > { %v743_v59 = vunpack.i.h.bf16 %v741_v57  ;;  %v742_v60 = vunpack.i.l.bf16 %v741_v57  ;;  %v392_v3 = vsel %vm390_vm6, %v387_v29, %v389_v56  ;;  %v451_v10 = vsel %vm447_vm13, %v346_v61, %v416_v0 }
 0x113   : > { %v450_v13 = vsel %vm447_vm13, %v345_v62, %v415_v2  ;;  %v433_v6 = vrot.slane %v372_v58, 4  ;;  %v396_v21 = vsel %vm879_vm8, %v381_v18, %v392_v3  ;;  %v432_v29 = vrot.slane %v371_v1, 4 }
 0x114   : > { %v410_v4 = vsel %vm408_vm12, %v742_v60, %v743_v59  ;;  %v409_v7 = vsel %vm408_vm12, %v403_v32, %v742_v60  ;;  %v395_v32 = vsel %vm875_vm5, %v380_v25, %v391_v55  ;;  %v398_v37 = vsel %vm883_vm10, %v392_v3, %v381_v18 }
 0x115   : > { %v751_v8 = vpop.permute.xlu1 %750  ;;  %v746_v9 = vpop.permute.xlu0 %745  ;;  %v449_v11 = vsel %vm447_vm13, %v340_v63, %v410_v4  ;;  %v448_v12 = vsel %vm447_vm13, %v339_v5, %v409_v7 }
 0x116   : > { %v753_v14 = vunpack.i.h.bf16 %v751_v8  ;;  %v752_v15 = vunpack.i.l.bf16 %v751_v8  ;;  %v748_v16 = vunpack.i.h.bf16 %v746_v9  ;;  %v747_v17 = vunpack.i.l.bf16 %v746_v9 }
 0x117   : > { %v679_v19 = vpack.c.bf16 %v451_v10, %v449_v11  ;;  %v681_v20 = vpack.c.bf16 %v450_v13, %v448_v12 }
 0x118   : > { %v444_v22 = vsel %vm442_vm14, %v752_v15, %v753_v14  ;;  %v427_v24 = vsel %vm425_vm15, %v747_v17, %v748_v16 }
 0x119   : > { %680 = vmatprep.subr.bf16.mxu0 %v679_v19  ;;  %v437_v27 = vpop.permute.xlu1 %436  ;;  %v420_v28 = vpop.permute.xlu0 %419  ;;  %v453_v30 = vsel %vm447_vm13, %v427_v24, %v433_v6  ;;  %v455_v31 = vsel %vm447_vm13, %v396_v21, %v444_v22 }
 0x11a   : > { %v443_v33 = vsel %vm442_vm14, %v437_v27, %v752_v15  ;;  %v426_v34 = vsel %vm425_vm15, %v420_v28, %v747_v17  ;;  %682 = vmatpush1.bf16.msra.mxu0 %v681_v20  ;;  %v683_v35 = vpack.c.bf16 %v455_v31, %v453_v30 }
 0x11b   : > { %v454_v36 = vsel %vm447_vm13, %v395_v32, %v443_v33  ;;  %v452_v23 = vsel %vm447_vm13, %v426_v34, %v432_v29 }
 0x11c   : > { %684 = vmatprep.subr.bf16.mxu0 %v683_v35  ;;  %v685_v26 = vpack.c.bf16 %v454_v36, %v452_v23 }
 0x11e   : > { %686 = vmatpush1.bf16.msra.mxu0 %v685_v26 }
 0x11f   : > { %670 = vmatprep.subr.msk.mxu0 %vm447_vm13, %v398_v37 }
 0x122   : > { %671 = vmatpush1.msk.msra.mxu0 %vm447_vm13, %v397_v39 }
 0x123   : > { %672 = vmatmul.mubr.msk.f32.vlgmr.msra.gmra.mrb[0].mxu0 %vm463_vm0, %v456_v38 }
 0x12a   : > { %v461_v40 = vpop.permute.xlu0 %460 }
 0x1f6   : > { %v539_v41 = vpop.f32.mrb[0].mxu0 }
 0x1f7   : > { %v540_v42 = vadd.f32 %v539_v41, %v461_v40  ;;  %v541_v43 = vpop.f32.mrb[1].mxu0 }
 0x1f8   : > { %v542_v44 = vadd.f32 %v541_v43, %v461_v40 }
 0x1f9   : > { %v544_v45 = vmin.f32 %v540_v42, 0.0  ;;  %vm552_vm1 = vcmp.gt.f32.partialorder %v540_v42, 0.0 }
 0x1fa   : > { %v545_v46 = vmin.f32 %v542_v44, 0.0  ;;  %vm553_vm2 = vcmp.gt.f32.partialorder %v542_v44, 0.0 }
 0x1fb   : > { %v546_v47 = vmul.f32 1.442695, %v544_v45 }
 0x1fc   : > { %v548_v49 = vmul.f32 1.442695, %v545_v46 }
 0x1fd   : > { %756 = vpow2.f32 %v546_v47 }
 0x1fe   : > { %758 = vpow2.f32 %v548_v49 }
 0x207   : > { %v757_v50 = vpop.eup %756 }
 0x208   : > { %v759_v51 = vpop.eup %758  ;;  %v673_v48 = vadd.f32 -1.0, %v757_v50 }
 0x209   : > { %v674_v52 = vadd.f32 -1.0, %v759_v51 }
 0x20a   : > { %v554_v53 = vsel %vm552_vm1, %v540_v42, %v673_v48 }
 0x20b   : > { %556 = vst [vmem:[%s263_s23] sm:$0xff] %v554_v53  ;;  %v555_v54 = vsel %vm553_vm2, %v542_v44, %v674_v52 }
 0x20c   : > { %557 = vst [vmem:[%s263_s23 + $0x8] sm:$0xff] %v555_v54 }
 0x20d PF: > { %s14_s17 = sadd.s32 1, %s782_s17   ;;  %s971_s15 = smov %s778_s16 }
 0x20e   : > { %p11_p5 = scmp.ge.s32.totalorder %s14_s17, 4   ;;  %s972_s16 = smov %s974_s18 }
 0x210   :  { %13 = sbr.rel (!%p11_p5) target bundleno = 2 (0x2), region = 69 }

</bundles_post_ra>
